<compile_context>
chip_gen: v6e
topology: v6e:2x2x1
jax: 0.10.0
libtpu: 0.0.40
codegen_flags: <defaults>
</compile_context>

<pallas_src>
import functools
import math

import jax
import jax.numpy as jnp
from jax.experimental import pallas as pl
from jax.experimental.pallas import tpu as pltpu


def _proj_kernel(x_ref, w_ref, b_ref, o_ref, *, packed):
    # x_ref: (TM, Dp) native dtype
    # w_ref: (Dp, G) block-diag f32   [packed]   or (1, D) f32 [unpacked]
    # b_ref: (1,) f32 scalar in SMEM
    # o_ref: (TM, G) in x dtype
    x = x_ref[...].astype(jnp.float32)          # in-kernel upcast (v5e: no bf16 VPU)
    b = b_ref[0]
    if packed:
        # Segmented reduce over the G row-groups packed along the 128-lane axis,
        # expressed as one small matmul against a block-diagonal weight.  MXU is
        # idle otherwise in this HBM-bound kernel; HIGHEST keeps f32 parity.
        acc = jnp.dot(x, w_ref[...], preferred_element_type=jnp.float32,
                      precision=jax.lax.Precision.HIGHEST)      # (TM, G)
    else:
        # VPU elementwise multiply + XLU lane reduce; no MXU needed for N=1.
        acc = jnp.sum(x * w_ref[...], axis=-1, keepdims=True)   # (TM, 1)
    o_ref[...] = (acc + b).astype(o_ref.dtype)


def _round_down(a, b):
    return (a // b) * b


def continuous_output_projection(x, weight, bias, *, target_tile_bytes=4 * 1024 * 1024):
    """y = x @ weight.T + bias,  x: (..., d_model), weight: (1, d_model), bias: (1,)."""
    d_model = weight.shape[-1]
    lead_shape = x.shape[:-1]
    m = int(math.prod(lead_shape)) if lead_shape else 1

    x_flat = x.reshape(m, d_model)                      # NATIVE dtype, no wrapper cast
    w_row = weight.reshape(1, d_model).astype(jnp.float32)
    b_val = bias.reshape(1).astype(jnp.float32)

    # --- lane packing: G rows per 128-lane vector when d_model < 128 ---------
    g = 128 // d_model if (d_model < 128 and 128 % d_model == 0) else 1
    m_pad = ((m + g - 1) // g) * g
    if m_pad != m:
        # TODO(synk): avoid this copy by handling a ragged tail group in-kernel.
        x_flat = jnp.pad(x_flat, ((0, m_pad - m), (0, 0)))
    mp = m_pad // g
    dp = g * d_model
    x_packed = x_flat.reshape(mp, dp)                   # contiguous reshape (no copy)

    if g > 1:
        # Block-diagonal weight S[gg*D + d, gg] = w[d]  -> (Dp, G)
        eye = jnp.eye(g, dtype=jnp.float32)
        w_arg = (eye[:, None, :] * w_row.reshape(1, d_model, 1)).reshape(dp, g)
    else:
        w_arg = w_row                                   # (1, d_model)

    # --- byte-budget tiling of the (packed) row axis --------------------------
    elt = x_packed.dtype.itemsize
    sub = {4: 8, 2: 16, 1: 32}.get(elt, 8)              # sublane multiple per dtype
    rows = max(sub, _round_down(target_tile_bytes // (dp * elt), sub))
    if rows >= mp:
        tm = mp                                         # single full block ...
        if mp >= 2 * sub:
            # ... unless we can split so both v7x TensorCores get a grid step.
            half = ((mp + 1) // 2 + sub - 1) // sub * sub
            if half < mp:
                tm = half
    else:
        tm = rows                                       # multiple of `sub`, partial tail OK
    num_blocks = (mp + tm - 1) // tm

    cost = pl.CostEstimate(
        flops=2 * m * d_model,
        transcendentals=0,
        bytes_accessed=mp * dp * elt + mp * g * x_packed.dtype.itemsize + w_arg.size * 4,
    )

    kernel = functools.partial(_proj_kernel, packed=(g > 1))
    out = pl.pallas_call(
        kernel,
        out_shape=jax.ShapeDtypeStruct((mp, g), x_packed.dtype),
        grid=(num_blocks,),
        in_specs=[
            # x: one (TM, Dp) tile per grid step, double-buffered by Pallas
            pl.BlockSpec((tm, dp), lambda i: (i, 0)),
            # weight (row or block-diag): fetched once, resident across all tiles
            pl.BlockSpec(w_arg.shape, lambda i: (0, 0)),
            # bias: scalar in SMEM
            pl.BlockSpec(memory_space=pltpu.MemorySpace.SMEM),
        ],
        out_specs=pl.BlockSpec((tm, g), lambda i: (i, 0)),
        compiler_params=pltpu.CompilerParams(
            dimension_semantics=("parallel",),          # shard row tiles across TCs (v7x)
            vmem_limit_bytes=32 * 1024 * 1024,          # tiles ~4 MiB x2 << 32 MiB, v7x-safe
        ),
        cost_estimate=cost,
    )(x_packed, w_arg, b_val)

    # (Mp, G) packs G consecutive original rows per packed row -> flatten, drop
    # any pad rows (their garbage results live only in the sliced-off tail).
    return out.reshape(-1)[:m].reshape(*lead_shape, 1)


if __name__ == "__main__":
    key = jax.random.PRNGKey(0)
    k1, k2, k3, k4 = jax.random.split(key, 4)

    # --- check 1: d_model < 128 -> packed / block-diag matmul path (f32) ------
    d_model, batch, seq = 32, 2, 8
    bound = 1.0 / math.sqrt(d_model)
    weight = jax.random.uniform(k1, (1, d_model), jnp.float32, -bound, bound)
    bias = jax.random.uniform(k2, (1,), jnp.float32, -bound, bound)
    x = jax.random.normal(k3, (batch, seq, d_model), jnp.float32)

    y = jax.block_until_ready(continuous_output_projection(x, weight, bias))
    # exact-f32 reference (elementwise, avoids XLA's default low-precision dot)
    y_ref = jnp.sum(x * weight.reshape(-1), axis=-1, keepdims=True) + bias
    assert y.shape == (batch, seq, 1)
    assert jnp.allclose(y, y_ref, atol=1e-2, rtol=1e-2), float(jnp.max(jnp.abs(y - y_ref)))

    # --- check 2: d_model >= 128 -> unpacked VPU-reduce path, native bf16 x ---
    d_model2 = 256
    bound2 = 1.0 / math.sqrt(d_model2)
    w2 = jax.random.uniform(k4, (1, d_model2), jnp.float32, -bound2, bound2)
    b2 = jax.random.uniform(k2, (1,), jnp.float32, -bound2, bound2)
    x2 = jax.random.normal(k1, (batch, seq, d_model2), jnp.float32).astype(jnp.bfloat16)

    y2 = jax.block_until_ready(continuous_output_projection(x2, w2, b2))
    y2_ref = jnp.sum(x2.astype(jnp.float32) * w2.reshape(-1), axis=-1, keepdims=True) + b2
    assert y2.shape == (batch, seq, 1)
    assert jnp.allclose(y2.astype(jnp.float32), y2_ref, atol=3e-2, rtol=3e-2)

    print("KERNEL_OK")
</pallas_src>

<mosaic_0001>
module attributes {stable_mosaic.version = 11 : i64} {
  func.func @_proj_kernel(%arg0: i32, %arg1: memref<4x128xf32, #tpu.memory_space<vmem>>, %arg2: memref<128x4xf32, #tpu.memory_space<vmem>>, %arg3: memref<1xf32, #tpu.memory_space<smem>>, %arg4: memref<4x4xf32, #tpu.memory_space<vmem>>) attributes {dimension_semantics = [#tpu.dimension_semantics<parallel>], iteration_bounds = array<i64: 1>, scalar_prefetch = 0 : i64, scratch_operands = 0 : i64, tpu.core_type = #tpu.core_type<tc>, window_params = [{transform_indices = @transform_0, window_bounds = array<i64: 4, 128>}, {pipeline_mode = #tpu.pipeline_mode<synchronous>, transform_indices = @transform_1, window_bounds = array<i64: 128, 4>}, {transform_indices = @transform_2, window_bounds = array<i64: 1>}, {transform_indices = @transform_3, window_bounds = array<i64: 4, 4>}]} {
    %c0 = arith.constant 0 : index
    %c0_0 = arith.constant 0 : index
    %0 = vector.load %arg1[%c0, %c0_0] : memref<4x128xf32, #tpu.memory_space<vmem>>, vector<4x128xf32>
    %c0_1 = arith.constant 0 : index
    %1 = memref.load %arg3[%c0_1] : memref<1xf32, #tpu.memory_space<smem>>
    %c0_2 = arith.constant 0 : index
    %c0_3 = arith.constant 0 : index
    %2 = vector.load %arg2[%c0_2, %c0_3] : memref<128x4xf32, #tpu.memory_space<vmem>>, vector<128x4xf32>
    %cst = arith.constant dense<0.000000e+00> : vector<4x4xf32>
    %3 = tpu.matmul %0, %2, %cst {dimension_numbers = #tpu.dot_dimension_numbers<[1], [0], [0], [1], [0, 0, 1, 1], [], []>, precision = #tpu.contract_precision<fp32>} : vector<4x128xf32>, vector<128x4xf32>, vector<4x4xf32> -> vector<4x4xf32>
    %4 = vector.broadcast %1 : f32 to vector<4x4xf32>
    %5 = arith.addf %3, %4 : vector<4x4xf32>
    %c0_4 = arith.constant 0 : index
    %c0_5 = arith.constant 0 : index
    %6 = vector.load %arg4[%c0_4, %c0_5] : memref<4x4xf32, #tpu.memory_space<vmem>>, vector<4x4xf32>
    tpu.vector_store %arg4[%c0_4, %c0_5], %5 {strides = array<i32>} : memref<4x4xf32, #tpu.memory_space<vmem>>, vector<4x4xf32>,
    return
  }
  func.func @transform_0(%arg0: i32) -> (i32, i32) {
    %c0_i32 = arith.constant 0 : i32
    %c0_i32_0 = arith.constant 0 : i32
    return %arg0, %c0_i32 : i32, i32
  }
  func.func @transform_1(%arg0: i32) -> (i32, i32) {
    %c0_i32 = arith.constant 0 : i32
    %c0_i32_0 = arith.constant 0 : i32
    %c0_i32_1 = arith.constant 0 : i32
    return %c0_i32, %c0_i32_0 : i32, i32
  }
  func.func @transform_2(%arg0: i32) -> i32 {
    %c0_i32 = arith.constant 0 : i32
    %c0_i32_0 = arith.constant 0 : i32
    return %c0_i32 : i32
  }
  func.func @transform_3(%arg0: i32) -> (i32, i32) {
    %c0_i32 = arith.constant 0 : i32
    %c0_i32_0 = arith.constant 0 : i32
    return %arg0, %c0_i32 : i32, i32
  }
}

</mosaic_0001>

<bundles_post_ra>
// kernel: tpu_custom_call.1
= control target key start
LH: loop header
LB: loop body
LE: loop exit
PB: predicated region body
PF: predicated region fallthrough
CT: control target
= control target key end

     0   :  { %v1029_v3 = vmov 0.0   ;;  %vm1030_vm0 = vmmov 0   ;;  %s1472_s0 = inlined_call_operand.vmem [shape: f32[4,128], index: 0, kind: input, shape index: {}]   ;;  %s1473_s1 = inlined_call_operand.vmem [shape: f32[128,4], index: 1, kind: input, shape index: {}]   ;;  %s1474_s2 = inlined_call_operand.<no memory space> [shape: f32[1], index: 2, kind: input, shape index: {}]   ;;  %s1475_s3 = inlined_call_operand.hbm [shape: f32[4,4], index: 3, kind: output, shape index: {}]  }
   0x1   :  { %v33_v0 = vld [vmem:[%s1473_s1 + $0x78] sm:$0xff]  ;;  %v32_v1 = vld [vmem:[%s1473_s1 + $0x70] sm:$0xff]  ;;  %v31_v2 = vld [vmem:[%s1473_s1 + $0x68] sm:$0xff]  ;;  %794 = vmatprep.subr.mxu0 %v1029_v3  ;;  %829 = vmatprep.subr.mxu1 %v1029_v3 }
   0x2   :  { %v1062_v4 = vand.u32 4294901760, %v33_v0  ;;  %v1064_v5 = vand.u32 4294901760, %v32_v1  ;;  %v1066_v6 = vand.u32 4294901760, %v31_v2  ;;  %v30_v7 = vld [vmem:[%s1473_s1 + $0x60] sm:$0xff]  ;;  %v29_v8 = vld [vmem:[%s1473_s1 + $0x58] sm:$0xff]  ;;  %v28_v9 = vld [vmem:[%s1473_s1 + $0x50] sm:$0xff]  ;;  %826 = vmatprep.mubr.msk.f32.mxu0 %vm1030_vm0, %v1029_v3  ;;  %861 = vmatprep.mubr.msk.f32.mxu1 %vm1030_vm0, %v1029_v3 }
   0x3   :  { %v1078_v10 = vand.u32 4294901760, %v30_v7  ;;  %v1080_v11 = vand.u32 4294901760, %v29_v8  ;;  %v1082_v12 = vand.u32 4294901760, %v28_v9  ;;  %v27_v13 = vld [vmem:[%s1473_s1 + $0x48] sm:$0xff]  ;;  %v26_v14 = vld [vmem:[%s1473_s1 + $0x40] sm:$0xff]  ;;  %v25_v19 = vld [vmem:[%s1473_s1 + $0x38] sm:$0xff] }
   0x4   :  { %795 = vmatpush3.msra.mxu0 %v1062_v4  ;;  %v1096_v15 = vsub.f32 %v33_v0, %v1062_v4  ;;  %v1099_v16 = vsub.f32 %v32_v1, %v1064_v5  ;;  %v1101_v17 = vand.u32 4294901760, %v27_v13  ;;  %v1104_v18 = vsub.f32 %v31_v2, %v1066_v6  ;;  %v24_v26 = vld [vmem:[%s1473_s1 + $0x30] sm:$0xff] }
   0x5   :  { %796 = vmatprep.subr.mxu0 %v1029_v3  ;;  %v1111_v20 = vsub.f32 %v30_v7, %v1078_v10  ;;  %v1114_v21 = vsub.f32 %v29_v8, %v1080_v11  ;;  %v1120_v25 = vand.u32 4294901760, %v26_v14  ;;  %v1127_v28 = vand.u32 4294901760, %v25_v19 }
   0x6   :  { %797 = vmatpush3.msra.mxu0 %v1064_v5  ;;  %v129_v22 = vand.u32 4294901760, %v1096_v15  ;;  %v136_v23 = vand.u32 4294901760, %v1099_v16  ;;  %v143_v24 = vand.u32 4294901760, %v1104_v18  ;;  %v1131_v30 = vsub.f32 %v28_v9, %v1082_v12 }
   0x7   :  { %798 = vmatprep.subr.mxu0 %v1029_v3  ;;  %v150_v27 = vand.u32 4294901760, %v1111_v20  ;;  %v157_v29 = vand.u32 4294901760, %v1114_v21  ;;  %v1144_v34 = vsub.f32 %v27_v13, %v1101_v17 }
   0x8   :  { %799 = vmatpush3.msra.mxu0 %v1066_v6  ;;  %v130_v31 = vsub.f32 %v1096_v15, %v129_v22  ;;  %v137_v32 = vsub.f32 %v1099_v16, %v136_v23  ;;  %v144_v33 = vsub.f32 %v1104_v18, %v143_v24 }
   0x9   :  { %9 = vsyncpa [#allocation4], 0  ;;  %800 = vmatprep.subr.mxu0 %v1029_v3  ;;  %v1147_v35 = vand.u32 4294901760, %v24_v26  ;;  %v23_v36 = vld [vmem:[%s1473_s1 + $0x28] sm:$0xff]  ;;  %v151_v39 = vsub.f32 %v1111_v20, %v150_v27  ;;  %v164_v40 = vand.u32 4294901760, %v1131_v30  ;;  %v22_v41 = vld [vmem:[%s1473_s1 + $0x20] sm:$0xff]  ;;  %v158_v42 = vsub.f32 %v1114_v21, %v157_v29 }
   0xa   :  { %801 = vmatpush3.msra.mxu0 %v1078_v10  ;;  %v131_v37 = vand.u32 4294901760, %v130_v31  ;;  %v138_v38 = vand.u32 4294901760, %v137_v32  ;;  %v1165_v43 = vsub.f32 %v26_v14, %v1120_v25  ;;  %v145_v44 = vand.u32 4294901760, %v144_v33  ;;  %v21_v49 = vld [vmem:[%s1473_s1 + $0x18] sm:$0xff]  ;;  %v16_v50 = vld [vmem:[%s1472_s0] sm:$0xf] }
   0xb   :  { %802 = vmatprep.subr.mxu0 %v1029_v3  ;;  %v1168_v45 = vand.u32 4294901760, %v23_v36  ;;  %v171_v46 = vand.u32 4294901760, %v1144_v34  ;;  %v1172_v47 = vsub.f32 %v25_v19, %v1127_v28  ;;  %v1176_v48 = vand.u32 4294901760, %v22_v41  ;;  %v20_v54 = vld [vmem:[%s1473_s1 + $0x10] sm:$0xff]  ;;  %v19_v60 = vld [vmem:[%s1473_s1 + $0x8] sm:$0xff]  ;;  %v18_v7 = vld [vmem:[%s1473_s1] sm:$0xff] }
   0xc   :  { %803 = vmatpush3.msra.mxu0 %v1080_v11  ;;  %830 = vmatpush3.msra.mxu1 %v131_v37  ;;  %v152_v51 = vand.u32 4294901760, %v151_v39  ;;  %v165_v52 = vsub.f32 %v1131_v30, %v164_v40  ;;  %v178_v53 = vand.u32 4294901760, %v1165_v43  ;;  %v1193_v55 = vsub.f32 %v24_v26, %v1147_v35  ;;  %s1031_s19 = smov [#allocation3]  }
   0xd   :  { %804 = vmatprep.subr.mxu0 %v1029_v3  ;;  %831 = vmatprep.subr.mxu1 %v1029_v3  ;;  %v159_v56 = vand.u32 4294901760, %v158_v42  ;;  %v185_v57 = vand.u32 4294901760, %v1172_v47  ;;  %v172_v58 = vsub.f32 %v1144_v34, %v171_v46  ;;  %v1202_v59 = vand.u32 4294901760, %v21_v49  ;;  %s684_s20 = sshll.u32 %s1031_s19, 4  ;;  %s685_s20 = int_to_ptr.vmem [resolvable:$true] %s684_s20 }
   0xe   :  { %805 = vmatpush3.msra.mxu0 %v1082_v12  ;;  %832 = vmatpush3.msra.mxu1 %v138_v38  ;;  %v1208_v61 = vsub.f32 %v23_v36, %v1168_v45  ;;  %v1210_v62 = vand.u32 4294901760, %v16_v50  ;;  %v1214_v63 = vand.u32 4294901760, %v20_v54  ;;  %v166_v0 = vand.u32 4294901760, %v165_v52  ;;  %s1007_s21 = scalar_lea.vmem %s685_s20, 64  ;;  %p1012_p1 = scmp.lt.s32.totalorder %s685_s20, %s685_s20 }
   0xf   :  { %806 = vmatprep.subr.mxu0 %v1029_v3  ;;  %833 = vmatprep.subr.mxu1 %v1029_v3  ;;  %v179_v1 = vsub.f32 %v1165_v43, %v178_v53  ;;  %v192_v2 = vand.u32 4294901760, %v1193_v55  ;;  %v1225_v8 = vsub.f32 %v22_v41, %v1176_v48  ;;  %v186_v9 = vsub.f32 %v1172_v47, %v185_v57  ;;  %p1008_p0 = scmp.ne.s32.totalorder %s685_s20, %s1007_s21  ;;  %p1013_p2 = scmp.lt.s32.totalorder %s1007_s21, %s1007_s21 }
  0x10   :  { %807 = vmatpush3.msra.mxu0 %v1101_v17  ;;  %834 = vmatpush3.msra.mxu1 %v145_v44  ;;  %v1232_v13 = vand.u32 4294901760, %v19_v60  ;;  %v173_v14 = vand.u32 4294901760, %v172_v58  ;;  %v199_v19 = vand.u32 4294901760, %v1208_v61  ;;  %v1237_v26 = vsub.f32 %v16_v50, %v1210_v62 }
  0x11   :  { %808 = vmatprep.subr.mxu0 %v1029_v3  ;;  %835 = vmatprep.subr.mxu1 %v1029_v3  ;;  %v1240_v31 = vsub.f32 %v21_v49, %v1202_v59  ;;  %v1244_v32 = vand.u32 4294901760, %v18_v7  ;;  %v180_v33 = vand.u32 4294901760, %v179_v1  ;;  %v193_v36 = vsub.f32 %v1193_v55, %v192_v2  ;;  %p1014_p3 = por %p1013_p2, %p1012_p1 }
  0x12   :  { %809 = vmatpush3.msra.mxu0 %v1120_v25  ;;  %836 = vmatpush3.msra.mxu1 %v152_v51  ;;  %v206_v37 = vand.u32 4294901760, %v1225_v8  ;;  %v1252_v38 = vsub.f32 %v20_v54, %v1214_v63  ;;  %v187_v39 = vand.u32 4294901760, %v186_v9  ;;  %v200_v41 = vsub.f32 %v1208_v61, %v199_v19 }
  0x13   :  { %810 = vmatprep.subr.mxu0 %v1029_v3  ;;  %837 = vmatprep.subr.mxu1 %v1029_v3  ;;  %v118_v42 = vand.u32 4294901760, %v1237_v26  ;;  %v213_v44 = vand.u32 4294901760, %v1240_v31  ;;  %v1263_v49 = vsub.f32 %v19_v60, %v1232_v13  ;;  %v194_v50 = vand.u32 4294901760, %v193_v36  ;;  %p1015_p4 = pnand %p1014_p3, %p1008_p0 }
  0x14   :  { %811 = vmatpush3.msra.mxu0 %v1127_v28  ;;  %838 = vmatpush3.msra.mxu1 %v159_v56  ;;  %v207_v51 = vsub.f32 %v1225_v8, %v206_v37  ;;  %v220_v52 = vand.u32 4294901760, %v1252_v38  ;;  %v1273_v54 = vsub.f32 %v18_v7, %v1244_v32  ;;  %v201_v56 = vand.u32 4294901760, %v200_v41 }
  0x15   :  { %812 = vmatprep.subr.mxu0 %v1029_v3  ;;  %839 = vmatprep.subr.mxu1 %v1029_v3  ;;  %v119_v58 = vsub.f32 %v1237_v26, %v118_v42  ;;  %v214_v60 = vsub.f32 %v1240_v31, %v213_v44  ;;  %vm676_vm1 = vcmask 27648  }
  0x16   :  { %813 = vmatpush3.msra.mxu0 %v1147_v35  ;;  %840 = vmatpush3.msra.mxu1 %v166_v0  ;;  %v227_v0 = vand.u32 4294901760, %v1263_v49  ;;  %v208_v1 = vand.u32 4294901760, %v207_v51  ;;  %v221_v7 = vsub.f32 %v1252_v38, %v220_v52  ;;  %v234_v9 = vand.u32 4294901760, %v1273_v54 }
  0x17   :  { %814 = vmatprep.subr.mxu0 %v1029_v3  ;;  %841 = vmatprep.subr.mxu1 %v1029_v3 }
  0x18   :  { %815 = vmatpush3.msra.mxu0 %v1168_v45  ;;  %842 = vmatpush3.msra.mxu1 %v173_v14  ;;  %v120_v14 = vand.u32 4294901760, %v119_v58  ;;  %v228_v36 = vsub.f32 %v1263_v49, %v227_v0  ;;  %v235_v41 = vsub.f32 %v1273_v54, %v234_v9 }
  0x19   :  { %816 = vmatprep.subr.mxu0 %v1029_v3  ;;  %843 = vmatprep.subr.mxu1 %v1029_v3 }
  0x1a   :  { %817 = vmatpush3.msra.mxu0 %v1176_v48  ;;  %844 = vmatpush3.msra.mxu1 %v180_v33  ;;  %v215_v33 = vand.u32 4294901760, %v214_v60  ;;  %v236_v51 = vand.u32 4294901760, %v235_v41 }
  0x1b   :  { %818 = vmatprep.subr.mxu0 %v1029_v3  ;;  %845 = vmatprep.subr.mxu1 %v1029_v3 }
  0x1c   :  { %819 = vmatpush3.msra.mxu0 %v1202_v59  ;;  %846 = vmatpush3.msra.mxu1 %v187_v39  ;;  %v222_v39 = vand.u32 4294901760, %v221_v7 }
  0x1d   :  { %820 = vmatprep.subr.mxu0 %v1029_v3  ;;  %847 = vmatprep.subr.mxu1 %v1029_v3 }
  0x1e   :  { %821 = vmatpush3.msra.mxu0 %v1214_v63  ;;  %848 = vmatpush3.msra.mxu1 %v194_v50  ;;  %v229_v50 = vand.u32 4294901760, %v228_v36 }
  0x1f   :  { %822 = vmatprep.subr.mxu0 %v1029_v3  ;;  %849 = vmatprep.subr.mxu1 %v1029_v3 }
  0x20   :  { %823 = vmatpush3.msra.mxu0 %v1232_v13  ;;  %850 = vmatpush3.msra.mxu1 %v201_v56 }
  0x21   :  { %824 = vmatprep.subr.mxu0 %v1029_v3  ;;  %851 = vmatprep.subr.mxu1 %v1029_v3 }
  0x22   :  { %825 = vmatpush3.msra.mxu0 %v1244_v32  ;;  %852 = vmatpush3.msra.mxu1 %v208_v1 }
  0x23   :  { %853 = vmatprep.subr.mxu1 %v1029_v3  ;;  %864 = vmatprep.subr.mxu0 %v1029_v3 }
  0x24   :  { %827 = vmatmul.mubr.f32.vlgmr.msra.gmra.mxu0 %v120_v14  ;;  %854 = vmatpush3.msra.mxu1 %v215_v33 }
  0x25   :  { %865 = vmatpush3.msra.mxu0 %v1096_v15  ;;  %855 = vmatprep.subr.mxu1 %v1029_v3 }
  0x26   :  { %866 = vmatprep.subr.mxu0 %v1029_v3  ;;  %856 = vmatpush3.msra.mxu1 %v222_v39 }
  0x27   :  { %867 = vmatpush3.msra.mxu0 %v1099_v16  ;;  %857 = vmatprep.subr.mxu1 %v1029_v3 }
  0x28   :  { %868 = vmatprep.subr.mxu0 %v1029_v3  ;;  %858 = vmatpush3.msra.mxu1 %v229_v50 }
  0x29   :  { %869 = vmatpush3.msra.mxu0 %v1104_v18  ;;  %859 = vmatprep.subr.mxu1 %v1029_v3 }
  0x2a   :  { %870 = vmatprep.subr.mxu0 %v1029_v3  ;;  %860 = vmatpush3.msra.mxu1 %v236_v51 }
  0x2b   :  { %871 = vmatpush3.msra.mxu0 %v1111_v20  ;;  %862 = vmatmul.mubr.f32.vlgmr.msra.gmra.mxu1 %v1210_v62 }
  0x2c   :  { %872 = vmatprep.subr.mxu0 %v1029_v3  ;;  %899 = vmatprep.subr.mxu1 %v1029_v3 }
  0x2d   :  { %873 = vmatpush3.msra.mxu0 %v1114_v21  ;;  %900 = vmatpush3.msra.mxu1 %v1062_v4 }
  0x2e   :  { %874 = vmatprep.subr.mxu0 %v1029_v3  ;;  %901 = vmatprep.subr.mxu1 %v1029_v3 }
  0x2f   :  { %875 = vmatpush3.msra.mxu0 %v1131_v30  ;;  %902 = vmatpush3.msra.mxu1 %v1064_v5 }
  0x30   :  { %876 = vmatprep.subr.mxu0 %v1029_v3  ;;  %903 = vmatprep.subr.mxu1 %v1029_v3 }
  0x31   :  { %877 = vmatpush3.msra.mxu0 %v1144_v34  ;;  %904 = vmatpush3.msra.mxu1 %v1066_v6 }
  0x32   :  { %878 = vmatprep.subr.mxu0 %v1029_v3  ;;  %905 = vmatprep.subr.mxu1 %v1029_v3 }
  0x33   :  { %879 = vmatpush3.msra.mxu0 %v1165_v43  ;;  %906 = vmatpush3.msra.mxu1 %v1078_v10 }
  0x34   :  { %880 = vmatprep.subr.mxu0 %v1029_v3  ;;  %907 = vmatprep.subr.mxu1 %v1029_v3 }
  0x35   :  { %881 = vmatpush3.msra.mxu0 %v1172_v47  ;;  %908 = vmatpush3.msra.mxu1 %v1080_v11 }
  0x36   :  { %882 = vmatprep.subr.mxu0 %v1029_v3  ;;  %909 = vmatprep.subr.mxu1 %v1029_v3 }
  0x37   :  { %883 = vmatpush3.msra.mxu0 %v1193_v55  ;;  %910 = vmatpush3.msra.mxu1 %v1082_v12 }
  0x38   :  { %884 = vmatprep.subr.mxu0 %v1029_v3  ;;  %911 = vmatprep.subr.mxu1 %v1029_v3 }
  0x39   :  { %885 = vmatpush3.msra.mxu0 %v1208_v61  ;;  %912 = vmatpush3.msra.mxu1 %v1101_v17 }
  0x3a   :  { %886 = vmatprep.subr.mxu0 %v1029_v3  ;;  %913 = vmatprep.subr.mxu1 %v1029_v3 }
  0x3b   :  { %887 = vmatpush3.msra.mxu0 %v1225_v8  ;;  %914 = vmatpush3.msra.mxu1 %v1120_v25 }
  0x3c   :  { %888 = vmatprep.subr.mxu0 %v1029_v3  ;;  %915 = vmatprep.subr.mxu1 %v1029_v3 }
  0x3d   :  { %889 = vmatpush3.msra.mxu0 %v1240_v31  ;;  %916 = vmatpush3.msra.mxu1 %v1127_v28 }
  0x3e   :  { %890 = vmatprep.subr.mxu0 %v1029_v3  ;;  %917 = vmatprep.subr.mxu1 %v1029_v3 }
  0x3f   :  { %891 = vmatpush3.msra.mxu0 %v1252_v38  ;;  %918 = vmatpush3.msra.mxu1 %v1147_v35 }
  0x40   :  { %892 = vmatprep.subr.mxu0 %v1029_v3  ;;  %919 = vmatprep.subr.mxu1 %v1029_v3 }
  0x41   :  { %893 = vmatpush3.msra.mxu0 %v1263_v49  ;;  %920 = vmatpush3.msra.mxu1 %v1168_v45 }
  0x42   :  { %894 = vmatprep.subr.mxu0 %v1029_v3  ;;  %921 = vmatprep.subr.mxu1 %v1029_v3 }
  0x43   :  { %895 = vmatpush3.msra.mxu0 %v1273_v54  ;;  %896 = vmatprep.mubr.msk.f32.mxu0 %vm1030_vm0, %v1029_v3 }
  0x44   :  { %922 = vmatpush3.msra.mxu1 %v1176_v48  ;;  %897 = vmatmul.mubr.f32.vlgmr.msra.gmra.mxu0 %v1237_v26 }
  0x45   :  { %923 = vmatprep.subr.mxu1 %v1029_v3  ;;  %934 = vmatprep.subr.mxu0 %v1029_v3 }
  0x46   :  { %924 = vmatpush3.msra.mxu1 %v1202_v59  ;;  %935 = vmatpush3.msra.mxu0 %v129_v22 }
  0x47   :  { %925 = vmatprep.subr.mxu1 %v1029_v3  ;;  %936 = vmatprep.subr.mxu0 %v1029_v3 }
  0x48   :  { %926 = vmatpush3.msra.mxu1 %v1214_v63  ;;  %937 = vmatpush3.msra.mxu0 %v136_v23 }
  0x49   :  { %927 = vmatprep.subr.mxu1 %v1029_v3  ;;  %938 = vmatprep.subr.mxu0 %v1029_v3 }
  0x4a   :  { %928 = vmatpush3.msra.mxu1 %v1232_v13  ;;  %939 = vmatpush3.msra.mxu0 %v143_v24 }
  0x4b   :  { %929 = vmatprep.subr.mxu1 %v1029_v3  ;;  %940 = vmatprep.subr.mxu0 %v1029_v3 }
  0x4c   :  { %930 = vmatpush3.msra.mxu1 %v1244_v32  ;;  %931 = vmatprep.mubr.msk.f32.mxu1 %vm1030_vm0, %v1029_v3 }
  0x4d   :  { %941 = vmatpush3.msra.mxu0 %v150_v27  ;;  %932 = vmatmul.mubr.f32.vlgmr.msra.gmra.mxu1 %v118_v42 }
  0x4e   :  { %942 = vmatprep.subr.mxu0 %v1029_v3  ;;  %969 = vmatprep.subr.mxu1 %v1029_v3 }
  0x4f   :  { %943 = vmatpush3.msra.mxu0 %v157_v29  ;;  %970 = vmatpush3.msra.mxu1 %v1062_v4 }
  0x50   :  { %944 = vmatprep.subr.mxu0 %v1029_v3  ;;  %971 = vmatprep.subr.mxu1 %v1029_v3 }
  0x51   :  { %945 = vmatpush3.msra.mxu0 %v164_v40  ;;  %972 = vmatpush3.msra.mxu1 %v1064_v5 }
  0x52   :  { %946 = vmatprep.subr.mxu0 %v1029_v3  ;;  %973 = vmatprep.subr.mxu1 %v1029_v3 }
  0x53   :  { %947 = vmatpush3.msra.mxu0 %v171_v46  ;;  %974 = vmatpush3.msra.mxu1 %v1066_v6 }
  0x54   :  { %948 = vmatprep.subr.mxu0 %v1029_v3  ;;  %975 = vmatprep.subr.mxu1 %v1029_v3 }
  0x55   :  { %949 = vmatpush3.msra.mxu0 %v178_v53  ;;  %976 = vmatpush3.msra.mxu1 %v1078_v10 }
  0x56   :  { %950 = vmatprep.subr.mxu0 %v1029_v3  ;;  %977 = vmatprep.subr.mxu1 %v1029_v3 }
  0x57   :  { %951 = vmatpush3.msra.mxu0 %v185_v57  ;;  %978 = vmatpush3.msra.mxu1 %v1080_v11 }
  0x58   :  { %952 = vmatprep.subr.mxu0 %v1029_v3  ;;  %979 = vmatprep.subr.mxu1 %v1029_v3 }
  0x59   :  { %953 = vmatpush3.msra.mxu0 %v192_v2  ;;  %980 = vmatpush3.msra.mxu1 %v1082_v12 }
  0x5a   :  { %954 = vmatprep.subr.mxu0 %v1029_v3  ;;  %981 = vmatprep.subr.mxu1 %v1029_v3 }
  0x5b   :  { %955 = vmatpush3.msra.mxu0 %v199_v19  ;;  %982 = vmatpush3.msra.mxu1 %v1101_v17  ;;  %v34_v17 = vstv %s1474_s2 }
  0x5c   :  { %956 = vmatprep.subr.mxu0 %v1029_v3  ;;  %983 = vmatprep.subr.mxu1 %v1029_v3 }
  0x5d   :  { %957 = vmatpush3.msra.mxu0 %v206_v37  ;;  %984 = vmatpush3.msra.mxu1 %v1120_v25 }
  0x5e   :  { %958 = vmatprep.subr.mxu0 %v1029_v3  ;;  %985 = vmatprep.subr.mxu1 %v1029_v3 }
  0x5f   :  { %959 = vmatpush3.msra.mxu0 %v213_v44  ;;  %986 = vmatpush3.msra.mxu1 %v1127_v28 }
  0x60   :  { %960 = vmatprep.subr.mxu0 %v1029_v3  ;;  %987 = vmatprep.subr.mxu1 %v1029_v3 }
  0x61   :  { %961 = vmatpush3.msra.mxu0 %v220_v52  ;;  %988 = vmatpush3.msra.mxu1 %v1147_v35 }
  0x62   :  { %962 = vmatprep.subr.mxu0 %v1029_v3  ;;  %989 = vmatprep.subr.mxu1 %v1029_v3 }
  0x63   :  { %963 = vmatpush3.msra.mxu0 %v227_v0  ;;  %990 = vmatpush3.msra.mxu1 %v1168_v45 }
  0x64   :  { %964 = vmatprep.subr.mxu0 %v1029_v3  ;;  %991 = vmatprep.subr.mxu1 %v1029_v3 }
  0x65   :  { %965 = vmatpush3.msra.mxu0 %v234_v9  ;;  %966 = vmatprep.mubr.msk.f32.mxu0 %vm1030_vm0, %v1029_v3 }
  0x66   :  { %992 = vmatpush3.msra.mxu1 %v1176_v48  ;;  %967 = vmatmul.mubr.f32.vlgmr.msra.gmra.mxu0 %v1210_v62 }
  0x67   :  { %993 = vmatprep.subr.mxu1 %v1029_v3  ;;  %1001 = vmatprep.mubr.msk.f32.mxu1 %vm1030_vm0, %v1029_v3 }
  0x68   :  { %994 = vmatpush3.msra.mxu1 %v1202_v59 }
  0x69   :  { %995 = vmatprep.subr.mxu1 %v1029_v3 }
  0x6a   :  { %996 = vmatpush3.msra.mxu1 %v1214_v63 }
  0x6b   :  { %997 = vmatprep.subr.mxu1 %v1029_v3 }
  0x6c   :  { %998 = vmatpush3.msra.mxu1 %v1232_v13 }
  0x6d   :  { %999 = vmatprep.subr.mxu1 %v1029_v3 }
  0x6e   :  { %1000 = vmatpush3.msra.mxu1 %v1244_v32 }
  0x6f   :  { %1002 = vmatmul.mubr.f32.vlgmr.msra.gmra.mxu1 %v1210_v62 }
  0xe4   :  { %v122_v4 = vpop.f32.mrf.mxu0 }
  0xe5   :  { %v123_v18 = vadd.f32 %v122_v4, %v34_v17 }
  0xe6   :  { %v828_v5 = vpop.f32.mrf.mxu0 }
  0xeb   :  { %v273_v6 = vpop.f32.mrf.mxu1 }
  0xec   :  { %v274_v21 = vadd.f32 %v273_v6, %v123_v18 }
  0xed   :  { %v863_v10 = vpop.f32.mrf.mxu1 }
 0x104   :  { %v377_v11 = vpop.f32.mrf.mxu0 }
 0x105   :  { %v378_v22 = vadd.f32 %v377_v11, %v274_v21 }
 0x106   :  { %v898_v12 = vpop.f32.mrf.mxu0 }
 0x10d   :  { %v466_v15 = vpop.f32.mrf.mxu1 }
 0x10e   :  { %v467_v23 = vadd.f32 %v466_v15, %v378_v22 }
 0x10f   :  { %v933_v16 = vpop.f32.mrf.mxu1 }
 0x126   :  { %v585_v20 = vpop.f32.mrf.mxu0 }
 0x127   :  { %v586_v24 = vadd.f32 %v585_v20, %v467_v23 }
 0x128   :  { %v968_v3 = vpop.f32.mrf.mxu0 }
 0x12f   :  { %v672_v25 = vpop.f32.mrf.mxu1 }
 0x130   :  { %v673_v27 = vadd.f32 %v672_v25, %v586_v24 }
 0x131   :  { %v1003_v28 = vpop.f32.mrf.mxu1 }
 0x132   :  { %677 = vst.msk [vmem:[#allocation3] sm:$0xf] %vm676_vm1, %v673_v27 }
 0x133   :  { %1018 = shalt.err (!%p1015_p4)
}
 0x134   :  { %687 = dma.vmem_to_hbm [thread:$0]  %s685_s20, 64, %s1475_s3, [#allocation4]  }
 0x135   :  { %1027 = dma.done.wait [#allocation4], 64  }
 0x136   :  { %1028 = vsyncadd [#allocation4], 4294967232 }
 0x137   :  { %691 = vsyncpa [#allocation4], 1 }

</bundles_post_ra>
